<compile_context>
chip_gen: v6e
topology: v6e:2x2x1
jax: 0.10.0
libtpu: 0.0.40
codegen_flags: <defaults>
</compile_context>

<pallas_src>
import jax
import jax.numpy as jnp
import numpy as np
from jax.experimental import pallas as pl
from jax.experimental.pallas import tpu as pltpu


def bottleneck_kernel(x_ref, w1_ref, s1_ref, b1_ref,
                      w2_ref, s2_ref, b2_ref,
                      w3_ref, s3_ref, b3_ref,
                      out_ref, upad_ref, acc_ref):
    # x_ref / out_ref: (H, W, Cin); upad_ref: (H+2, W, 3P) bf16; acc_ref: (H*W, P) f32
    H, W, Cin = x_ref.shape
    P = w1_ref.shape[1]
    K = 3 * P

    x = x_ref[...]                                   # (H, W, Cin) f32
    xm = x.reshape(H * W, Cin)

    # ---- conv1 (1x1) + bn1 + relu : bf16 matmul, f32 accumulate / BN / ReLU ----
    t1 = jnp.dot(xm.astype(jnp.bfloat16), w1_ref[...],
                 preferred_element_type=jnp.float32)
    t1 = jnp.maximum(t1 * s1_ref[...] + b1_ref[...], 0.0)       # (H*W, P)
    t1 = t1.reshape(H, W, P)

    # ---- dx im2col via XLU roll + edge mask (no sublane-unaligned slices) ----
    col = jax.lax.broadcasted_iota(jnp.int32, (H, W, P), 1)
    left = jnp.where(col == 0, 0.0, pltpu.roll(t1, shift=1, axis=1))       # t1[:, w-1]
    right = jnp.where(col == W - 1, 0.0, pltpu.roll(t1, shift=W - 1, axis=1))  # t1[:, w+1]
    u = jnp.concatenate([left, t1, right], axis=-1).astype(jnp.bfloat16)   # (H, W, 3P)

    # Interior store is an outer-dim (H) offset => full-width unmasked stores.
    # Only the two halo rows are zeroed (not the whole buffer), every step so
    # the kernel is safe under megacore grid splitting.
    upad_ref[1:H + 1] = u
    zrow = jnp.zeros((1, W, K), jnp.bfloat16)
    upad_ref[0:1] = zrow
    upad_ref[H + 1:H + 2] = zrow

    # ---- conv2 (3x3, pad=1) as three K=3P bf16 matmuls over dy ----
    acc_ref[...] = jnp.dot(upad_ref[0:H].reshape(H * W, K), w2_ref[0],
                           preferred_element_type=jnp.float32)
    acc_ref[...] += jnp.dot(upad_ref[1:H + 1].reshape(H * W, K), w2_ref[1],
                            preferred_element_type=jnp.float32)
    acc_ref[...] += jnp.dot(upad_ref[2:H + 2].reshape(H * W, K), w2_ref[2],
                            preferred_element_type=jnp.float32)
    t2 = jnp.maximum(acc_ref[...] * s2_ref[...] + b2_ref[...], 0.0)   # (H*W, P)

    # ---- conv3 (1x1) + bn3 ----
    t3 = jnp.dot(t2.astype(jnp.bfloat16), w3_ref[...],
                 preferred_element_type=jnp.float32)
    t3 = t3 * s3_ref[...] + b3_ref[...]                               # (H*W, Cin)

    # ---- residual add + relu ----
    out = jnp.maximum(t3 + xm, 0.0)
    out_ref[...] = out.reshape(H, W, Cin)


def bottleneck_forward(x_nhwc, params):
    """x_nhwc: (N, H, W, Cin) float32. Returns (N, H, W, Cin) float32."""
    N, H, W, Cin = x_nhwc.shape
    P = params["w1"].shape[1]
    Cout = params["w3"].shape[1]
    assert Cout == Cin, "residual add requires inplanes == planes*4"

    # Weights cast to bf16 once; conv2 weights pre-reshaped to (3, 3P, P)
    # matching the [left | center | right] lane concatenation in the kernel.
    w1b = params["w1"].astype(jnp.bfloat16)
    w2b = params["w2"].reshape(3, 3 * P, P).astype(jnp.bfloat16)
    w3b = params["w3"].astype(jnp.bfloat16)

    full2 = lambda n: (0, 0)
    full3 = lambda n: (0, 0, 0)
    grid_spec = pltpu.PrefetchScalarGridSpec(
        num_scalar_prefetch=0,
        grid=(N,),
        in_specs=[
            pl.BlockSpec((None, H, W, Cin), lambda n: (n, 0, 0, 0)),   # x (batch squeezed)
            pl.BlockSpec((Cin, P), full2),                             # w1 (bf16)
            pl.BlockSpec((1, P), full2),                               # s1
            pl.BlockSpec((1, P), full2),                               # b1
            pl.BlockSpec((3, 3 * P, P), full3),                        # w2 rows (bf16)
            pl.BlockSpec((1, P), full2),                               # s2
            pl.BlockSpec((1, P), full2),                               # b2
            pl.BlockSpec((P, Cout), full2),                            # w3 (bf16)
            pl.BlockSpec((1, Cout), full2),                            # s3
            pl.BlockSpec((1, Cout), full2),                            # b3
        ],
        out_specs=pl.BlockSpec((None, H, W, Cin), lambda n: (n, 0, 0, 0)),
        scratch_shapes=[
            pltpu.VMEM((H + 2, W, 3 * P), jnp.bfloat16),   # H-padded dx-im2col
            pltpu.VMEM((H * W, P), jnp.float32),           # conv2 accumulator
        ],
    )

    return pl.pallas_call(
        bottleneck_kernel,
        out_shape=jax.ShapeDtypeStruct((N, H, W, Cin), jnp.float32),
        grid_spec=grid_spec,
        compiler_params=pltpu.CompilerParams(
            dimension_semantics=("parallel",),
            vmem_limit_bytes=48 * 1024 * 1024),
    )(x_nhwc,
      w1b, params["s1"], params["b1"],
      w2b, params["s2"], params["b2"],
      w3b, params["s3"], params["b3"])


def make_params(key, inplanes, planes, eps=1e-5):
    """Deterministic parameters. BN folded into per-channel scale/bias."""
    ks = jax.random.split(key, 12)
    cout = planes * 4

    def bn_fold(kg, kb, km, kv, c):
        gamma = jax.random.uniform(kg, (c,), jnp.float32, 0.5, 1.5)
        beta = jax.random.normal(kb, (c,), jnp.float32) * 0.1
        mean = jax.random.normal(km, (c,), jnp.float32) * 0.1
        var = jax.random.uniform(kv, (c,), jnp.float32, 0.5, 1.5)
        scale = gamma / jnp.sqrt(var + eps)
        bias = beta - mean * scale
        return scale.reshape(1, c), bias.reshape(1, c)

    w1 = jax.random.normal(ks[0], (inplanes, planes), jnp.float32) * 0.1
    w2 = jax.random.normal(ks[1], (3, 3, planes, planes), jnp.float32) * 0.1
    w3 = jax.random.normal(ks[2], (planes, cout), jnp.float32) * 0.1
    s1, b1 = bn_fold(ks[3], ks[4], ks[5], ks[6], planes)
    s2, b2 = bn_fold(ks[7], ks[8], ks[9], ks[10], planes)
    s3, b3 = bn_fold(ks[11], ks[3], ks[7], ks[0], cout)  # reuse keys, still deterministic
    return dict(w1=w1, w2=w2, w3=w3, s1=s1, b1=b1, s2=s2, b2=b2, s3=s3, b3=b3)


def reference_forward(x_nhwc, p):
    """Pure-JAX f32 reference for validation (same NHWC layout / folded BN)."""
    def conv1x1(x, w):
        return jnp.einsum("nhwc,cd->nhwd", x, w)

    def conv3x3(x, w):
        return jax.lax.conv_general_dilated(
            x, w, window_strides=(1, 1), padding="SAME",
            dimension_numbers=("NHWC", "HWIO", "NHWC"))

    t = jax.nn.relu(conv1x1(x_nhwc, p["w1"]) * p["s1"][0] + p["b1"][0])
    t = jax.nn.relu(conv3x3(t, p["w2"]) * p["s2"][0] + p["b2"][0])
    t = conv1x1(t, p["w3"]) * p["s3"][0] + p["b3"][0]
    return jax.nn.relu(t + x_nhwc)


if __name__ == "__main__":
    # Small shapes consistent with the module: inplanes == planes * 4.
    N, inplanes, planes, H, W = 2, 16, 4, 8, 8

    key = jax.random.PRNGKey(0)
    kx, kp = jax.random.split(key)

    # PyTorch-style NCHW input, then convert to the kernel's NHWC layout.
    x_nchw = jax.random.normal(kx, (N, inplanes, H, W), jnp.float32)
    x_nhwc = jnp.transpose(x_nchw, (0, 2, 3, 1))

    params = make_params(kp, inplanes, planes)

    out_nhwc = bottleneck_forward(x_nhwc, params)
    out_nhwc = jax.block_until_ready(out_nhwc)
    out_nchw = jnp.transpose(out_nhwc, (0, 3, 1, 2))  # back to NCHW

    ref = reference_forward(x_nhwc, params)
    # Tolerances loosened vs. the pure-f32 version: matmuls now run on the
    # bf16 MXU path (with f32 accumulation).
    np.testing.assert_allclose(np.asarray(out_nhwc), np.asarray(ref),
                               rtol=2e-2, atol=2e-2)

    print("KERNEL_OK")
</pallas_src>

<mosaic_0001>
module attributes {stable_mosaic.version = 11 : i64} {
  func.func @bottleneck_kernel(%arg0: i32, %arg1: memref<1x8x8x16xf32, #tpu.memory_space<vmem>>, %arg2: memref<16x4xbf16, #tpu.memory_space<vmem>>, %arg3: memref<1x4xf32, #tpu.memory_space<vmem>>, %arg4: memref<1x4xf32, #tpu.memory_space<vmem>>, %arg5: memref<3x12x4xbf16, #tpu.memory_space<vmem>>, %arg6: memref<1x4xf32, #tpu.memory_space<vmem>>, %arg7: memref<1x4xf32, #tpu.memory_space<vmem>>, %arg8: memref<4x16xbf16, #tpu.memory_space<vmem>>, %arg9: memref<1x16xf32, #tpu.memory_space<vmem>>, %arg10: memref<1x16xf32, #tpu.memory_space<vmem>>, %arg11: memref<1x8x8x16xf32, #tpu.memory_space<vmem>>, %arg12: memref<10x8x12xbf16, #tpu.memory_space<vmem>>, %arg13: memref<64x4xf32, #tpu.memory_space<vmem>>) attributes {dimension_semantics = [#tpu.dimension_semantics<parallel>], iteration_bounds = array<i64: 2>, scalar_prefetch = 0 : i64, scratch_operands = 2 : i64, tpu.core_type = #tpu.core_type<tc>, window_params = [{transform_indices = @transform_0, window_bounds = array<i64: 1, 8, 8, 16>}, {pipeline_mode = #tpu.pipeline_mode<synchronous>, transform_indices = @transform_1, window_bounds = array<i64: 16, 4>}, {pipeline_mode = #tpu.pipeline_mode<synchronous>, transform_indices = @transform_2, window_bounds = array<i64: 1, 4>}, {pipeline_mode = #tpu.pipeline_mode<synchronous>, transform_indices = @transform_3, window_bounds = array<i64: 1, 4>}, {pipeline_mode = #tpu.pipeline_mode<synchronous>, transform_indices = @transform_4, window_bounds = array<i64: 3, 12, 4>}, {pipeline_mode = #tpu.pipeline_mode<synchronous>, transform_indices = @transform_5, window_bounds = array<i64: 1, 4>}, {pipeline_mode = #tpu.pipeline_mode<synchronous>, transform_indices = @transform_6, window_bounds = array<i64: 1, 4>}, {pipeline_mode = #tpu.pipeline_mode<synchronous>, transform_indices = @transform_7, window_bounds = array<i64: 4, 16>}, {pipeline_mode = #tpu.pipeline_mode<synchronous>, transform_indices = @transform_8, window_bounds = array<i64: 1, 16>}, {pipeline_mode = #tpu.pipeline_mode<synchronous>, transform_indices = @transform_9, window_bounds = array<i64: 1, 16>}, {transform_indices = @transform_10, window_bounds = array<i64: 1, 8, 8, 16>}]} {
    %c0 = arith.constant 0 : index
    %c0_0 = arith.constant 0 : index
    %c0_1 = arith.constant 0 : index
    %c0_2 = arith.constant 0 : index
    %0 = vector.load %arg1[%c0, %c0_0, %c0_1, %c0_2] : memref<1x8x8x16xf32, #tpu.memory_space<vmem>>, vector<1x8x8x16xf32>
    %1 = vector.shape_cast %0 : vector<1x8x8x16xf32> to vector<8x8x16xf32>
    %2 = vector.shape_cast %1 : vector<8x8x16xf32> to vector<64x16xf32>
    %3 = arith.truncf %2 : vector<64x16xf32> to vector<64x16xbf16>
    %c0_3 = arith.constant 0 : index
    %c0_4 = arith.constant 0 : index
    %4 = vector.load %arg2[%c0_3, %c0_4] : memref<16x4xbf16, #tpu.memory_space<vmem>>, vector<16x4xbf16>
    %cst = arith.constant dense<0.000000e+00> : vector<64x4xf32>
    %5 = tpu.matmul %3, %4, %cst {dimension_numbers = #tpu.dot_dimension_numbers<[1], [0], [0], [1], [0, 0, 1, 1], [], []>} : vector<64x16xbf16>, vector<16x4xbf16>, vector<64x4xf32> -> vector<64x4xf32>
    %c0_5 = arith.constant 0 : index
    %c0_6 = arith.constant 0 : index
    %6 = vector.load %arg3[%c0_5, %c0_6] : memref<1x4xf32, #tpu.memory_space<vmem>>, vector<1x4xf32>
    %7 = vector.broadcast %6 : vector<1x4xf32> to vector<64x4xf32>
    %8 = arith.mulf %5, %7 : vector<64x4xf32>
    %c0_7 = arith.constant 0 : index
    %c0_8 = arith.constant 0 : index
    %9 = vector.load %arg4[%c0_7, %c0_8] : memref<1x4xf32, #tpu.memory_space<vmem>>, vector<1x4xf32>
    %10 = vector.broadcast %9 : vector<1x4xf32> to vector<64x4xf32>
    %11 = arith.addf %8, %10 : vector<64x4xf32>
    %cst_9 = arith.constant 0.000000e+00 : f32
    %12 = vector.broadcast %cst_9 : f32 to vector<64x4xf32>
    %13 = arith.maximumf %11, %12 : vector<64x4xf32>
    %14 = vector.shape_cast %13 : vector<64x4xf32> to vector<8x8x4xf32>
    %15 = tpu.iota {dimensions = array<i32: 1>} : vector<8x8x4xi32>
    %c0_i32 = arith.constant 0 : i32
    %16 = vector.broadcast %c0_i32 : i32 to vector<8x8x4xi32>
    %17 = arith.cmpi eq, %15, %16 : vector<8x8x4xi32>
    %c1_i32 = arith.constant 1 : i32
    %18 = tpu.dynamic_rotate %14 by %c1_i32 dim 1 : vector<8x8x4xf32>, i32 -> vector<8x8x4xf32>
    %cst_10 = arith.constant 0.000000e+00 : f32
    %19 = vector.broadcast %cst_10 : f32 to vector<8x8x4xf32>
    %20 = arith.select %17, %19, %18 : vector<8x8x4xi1>, vector<8x8x4xf32>
    %c7_i32 = arith.constant 7 : i32
    %21 = vector.broadcast %c7_i32 : i32 to vector<8x8x4xi32>
    %22 = arith.cmpi eq, %15, %21 : vector<8x8x4xi32>
    %c7_i32_11 = arith.constant 7 : i32
    %23 = tpu.dynamic_rotate %14 by %c7_i32_11 dim 1 : vector<8x8x4xf32>, i32 -> vector<8x8x4xf32>
    %cst_12 = arith.constant 0.000000e+00 : f32
    %24 = vector.broadcast %cst_12 : f32 to vector<8x8x4xf32>
    %25 = arith.select %22, %24, %23 : vector<8x8x4xi1>, vector<8x8x4xf32>
    %26 = tpu.concatenate %20, %14, %25 in 2 : vector<8x8x4xf32>, vector<8x8x4xf32>, vector<8x8x4xf32> -> vector<8x8x12xf32>
    %27 = arith.truncf %26 : vector<8x8x12xf32> to vector<8x8x12xbf16>
    %c1 = arith.constant 1 : index
    %c0_13 = arith.constant 0 : index
    %c0_14 = arith.constant 0 : index
    %28 = vector.load %arg12[%c1, %c0_13, %c0_14] : memref<10x8x12xbf16, #tpu.memory_space<vmem>>, vector<8x8x12xbf16>
    tpu.vector_store %arg12[%c1, %c0_13, %c0_14], %27 {strides = array<i32>} : memref<10x8x12xbf16, #tpu.memory_space<vmem>>, vector<8x8x12xbf16>,
    %cst_15 = arith.constant 0.000000e+00 : bf16
    %29 = vector.broadcast %cst_15 : bf16 to vector<1x8x12xbf16>
    %c0_16 = arith.constant 0 : index
    %c0_17 = arith.constant 0 : index
    %c0_18 = arith.constant 0 : index
    %30 = vector.load %arg12[%c0_16, %c0_17, %c0_18] : memref<10x8x12xbf16, #tpu.memory_space<vmem>>, vector<1x8x12xbf16>
    tpu.vector_store %arg12[%c0_16, %c0_17, %c0_18], %29 {strides = array<i32>} : memref<10x8x12xbf16, #tpu.memory_space<vmem>>, vector<1x8x12xbf16>,
    %c9 = arith.constant 9 : index
    %c0_19 = arith.constant 0 : index
    %c0_20 = arith.constant 0 : index
    %31 = vector.load %arg12[%c9, %c0_19, %c0_20] : memref<10x8x12xbf16, #tpu.memory_space<vmem>>, vector<1x8x12xbf16>
    tpu.vector_store %arg12[%c9, %c0_19, %c0_20], %29 {strides = array<i32>} : memref<10x8x12xbf16, #tpu.memory_space<vmem>>, vector<1x8x12xbf16>,
    %c0_21 = arith.constant 0 : index
    %c0_22 = arith.constant 0 : index
    %c0_23 = arith.constant 0 : index
    %32 = vector.load %arg12[%c0_21, %c0_22, %c0_23] : memref<10x8x12xbf16, #tpu.memory_space<vmem>>, vector<8x8x12xbf16>
    %33 = vector.shape_cast %32 : vector<8x8x12xbf16> to vector<64x12xbf16>
    %c0_24 = arith.constant 0 : index
    %c0_25 = arith.constant 0 : index
    %c0_26 = arith.constant 0 : index
    %34 = vector.load %arg5[%c0_24, %c0_25, %c0_26] : memref<3x12x4xbf16, #tpu.memory_space<vmem>>, vector<1x12x4xbf16>
    %35 = vector.shape_cast %34 : vector<1x12x4xbf16> to vector<12x4xbf16>
    %cst_27 = arith.constant dense<0.000000e+00> : vector<64x4xf32>
    %36 = tpu.matmul %33, %35, %cst_27 {dimension_numbers = #tpu.dot_dimension_numbers<[1], [0], [0], [1], [0, 0, 1, 1], [], []>} : vector<64x12xbf16>, vector<12x4xbf16>, vector<64x4xf32> -> vector<64x4xf32>
    %c0_28 = arith.constant 0 : index
    %c0_29 = arith.constant 0 : index
    %37 = vector.load %arg13[%c0_28, %c0_29] : memref<64x4xf32, #tpu.memory_space<vmem>>, vector<64x4xf32>
    tpu.vector_store %arg13[%c0_28, %c0_29], %36 {strides = array<i32>} : memref<64x4xf32, #tpu.memory_space<vmem>>, vector<64x4xf32>,
    %c0_30 = arith.constant 0 : index
    %c0_31 = arith.constant 0 : index
    %38 = vector.load %arg13[%c0_30, %c0_31] : memref<64x4xf32, #tpu.memory_space<vmem>>, vector<64x4xf32>
    %c1_32 = arith.constant 1 : index
    %c0_33 = arith.constant 0 : index
    %c0_34 = arith.constant 0 : index
    %39 = vector.load %arg12[%c1_32, %c0_33, %c0_34] : memref<10x8x12xbf16, #tpu.memory_space<vmem>>, vector<8x8x12xbf16>
    %40 = vector.shape_cast %39 : vector<8x8x12xbf16> to vector<64x12xbf16>
    %c1_35 = arith.constant 1 : index
    %c0_36 = arith.constant 0 : index
    %c0_37 = arith.constant 0 : index
    %41 = vector.load %arg5[%c1_35, %c0_36, %c0_37] : memref<3x12x4xbf16, #tpu.memory_space<vmem>>, vector<1x12x4xbf16>
    %42 = vector.shape_cast %41 : vector<1x12x4xbf16> to vector<12x4xbf16>
    %cst_38 = arith.constant dense<0.000000e+00> : vector<64x4xf32>
    %43 = tpu.matmul %40, %42, %cst_38 {dimension_numbers = #tpu.dot_dimension_numbers<[1], [0], [0], [1], [0, 0, 1, 1], [], []>} : vector<64x12xbf16>, vector<12x4xbf16>, vector<64x4xf32> -> vector<64x4xf32>
    %44 = arith.addf %38, %43 : vector<64x4xf32>
    %c0_39 = arith.constant 0 : index
    %c0_40 = arith.constant 0 : index
    %45 = vector.load %arg13[%c0_39, %c0_40] : memref<64x4xf32, #tpu.memory_space<vmem>>, vector<64x4xf32>
    tpu.vector_store %arg13[%c0_39, %c0_40], %44 {strides = array<i32>} : memref<64x4xf32, #tpu.memory_space<vmem>>, vector<64x4xf32>,
    %c0_41 = arith.constant 0 : index
    %c0_42 = arith.constant 0 : index
    %46 = vector.load %arg13[%c0_41, %c0_42] : memref<64x4xf32, #tpu.memory_space<vmem>>, vector<64x4xf32>
    %c2 = arith.constant 2 : index
    %c0_43 = arith.constant 0 : index
    %c0_44 = arith.constant 0 : index
    %47 = vector.load %arg12[%c2, %c0_43, %c0_44] : memref<10x8x12xbf16, #tpu.memory_space<vmem>>, vector<8x8x12xbf16>
    %48 = vector.shape_cast %47 : vector<8x8x12xbf16> to vector<64x12xbf16>
    %c2_45 = arith.constant 2 : index
    %c0_46 = arith.constant 0 : index
    %c0_47 = arith.constant 0 : index
    %49 = vector.load %arg5[%c2_45, %c0_46, %c0_47] : memref<3x12x4xbf16, #tpu.memory_space<vmem>>, vector<1x12x4xbf16>
    %50 = vector.shape_cast %49 : vector<1x12x4xbf16> to vector<12x4xbf16>
    %cst_48 = arith.constant dense<0.000000e+00> : vector<64x4xf32>
    %51 = tpu.matmul %48, %50, %cst_48 {dimension_numbers = #tpu.dot_dimension_numbers<[1], [0], [0], [1], [0, 0, 1, 1], [], []>} : vector<64x12xbf16>, vector<12x4xbf16>, vector<64x4xf32> -> vector<64x4xf32>
    %52 = arith.addf %46, %51 : vector<64x4xf32>
    %c0_49 = arith.constant 0 : index
    %c0_50 = arith.constant 0 : index
    %53 = vector.load %arg13[%c0_49, %c0_50] : memref<64x4xf32, #tpu.memory_space<vmem>>, vector<64x4xf32>
    tpu.vector_store %arg13[%c0_49, %c0_50], %52 {strides = array<i32>} : memref<64x4xf32, #tpu.memory_space<vmem>>, vector<64x4xf32>,
    %c0_51 = arith.constant 0 : index
    %c0_52 = arith.constant 0 : index
    %54 = vector.load %arg13[%c0_51, %c0_52] : memref<64x4xf32, #tpu.memory_space<vmem>>, vector<64x4xf32>
    %c0_53 = arith.constant 0 : index
    %c0_54 = arith.constant 0 : index
    %55 = vector.load %arg6[%c0_53, %c0_54] : memref<1x4xf32, #tpu.memory_space<vmem>>, vector<1x4xf32>
    %56 = vector.broadcast %55 : vector<1x4xf32> to vector<64x4xf32>
    %57 = arith.mulf %54, %56 : vector<64x4xf32>
    %c0_55 = arith.constant 0 : index
    %c0_56 = arith.constant 0 : index
    %58 = vector.load %arg7[%c0_55, %c0_56] : memref<1x4xf32, #tpu.memory_space<vmem>>, vector<1x4xf32>
    %59 = vector.broadcast %58 : vector<1x4xf32> to vector<64x4xf32>
    %60 = arith.addf %57, %59 : vector<64x4xf32>
    %cst_57 = arith.constant 0.000000e+00 : f32
    %61 = vector.broadcast %cst_57 : f32 to vector<64x4xf32>
    %62 = arith.maximumf %60, %61 : vector<64x4xf32>
    %63 = arith.truncf %62 : vector<64x4xf32> to vector<64x4xbf16>
    %c0_58 = arith.constant 0 : index
    %c0_59 = arith.constant 0 : index
    %64 = vector.load %arg8[%c0_58, %c0_59] : memref<4x16xbf16, #tpu.memory_space<vmem>>, vector<4x16xbf16>
    %cst_60 = arith.constant dense<0.000000e+00> : vector<64x16xf32>
    %65 = tpu.matmul %63, %64, %cst_60 {dimension_numbers = #tpu.dot_dimension_numbers<[1], [0], [0], [1], [0, 0, 1, 1], [], []>} : vector<64x4xbf16>, vector<4x16xbf16>, vector<64x16xf32> -> vector<64x16xf32>
    %c0_61 = arith.constant 0 : index
    %c0_62 = arith.constant 0 : index
    %66 = vector.load %arg9[%c0_61, %c0_62] : memref<1x16xf32, #tpu.memory_space<vmem>>, vector<1x16xf32>
    %67 = vector.broadcast %66 : vector<1x16xf32> to vector<64x16xf32>
    %68 = arith.mulf %65, %67 : vector<64x16xf32>
    %c0_63 = arith.constant 0 : index
    %c0_64 = arith.constant 0 : index
    %69 = vector.load %arg10[%c0_63, %c0_64] : memref<1x16xf32, #tpu.memory_space<vmem>>, vector<1x16xf32>
    %70 = vector.broadcast %69 : vector<1x16xf32> to vector<64x16xf32>
    %71 = arith.addf %68, %70 : vector<64x16xf32>
    %72 = arith.addf %71, %2 : vector<64x16xf32>
    %cst_65 = arith.constant 0.000000e+00 : f32
    %73 = vector.broadcast %cst_65 : f32 to vector<64x16xf32>
    %74 = arith.maximumf %72, %73 : vector<64x16xf32>
    %75 = vector.shape_cast %74 : vector<64x16xf32> to vector<8x8x16xf32>
    %c0_66 = arith.constant 0 : index
    %c0_67 = arith.constant 0 : index
    %c0_68 = arith.constant 0 : index
    %c0_69 = arith.constant 0 : index
    %76 = vector.load %arg11[%c0_66, %c0_67, %c0_68, %c0_69] : memref<1x8x8x16xf32, #tpu.memory_space<vmem>>, vector<1x8x8x16xf32>
    %77 = vector.shape_cast %76 : vector<1x8x8x16xf32> to vector<8x8x16xf32>
    %78 = vector.shape_cast %75 : vector<8x8x16xf32> to vector<1x8x8x16xf32>
    tpu.vector_store %arg11[%c0_66, %c0_67, %c0_68, %c0_69], %78 {strides = array<i32>} : memref<1x8x8x16xf32, #tpu.memory_space<vmem>>, vector<1x8x8x16xf32>,
    return
  }
  func.func @transform_0(%arg0: i32) -> (i32, i32, i32, i32) {
    %c0_i32 = arith.constant 0 : i32
    %c0_i32_0 = arith.constant 0 : i32
    %c0_i32_1 = arith.constant 0 : i32
    %c0_i32_2 = arith.constant 0 : i32
    return %arg0, %c0_i32, %c0_i32_0, %c0_i32_1 : i32, i32, i32, i32
  }
  func.func @transform_1(%arg0: i32) -> (i32, i32) {
    %c0_i32 = arith.constant 0 : i32
    %c0_i32_0 = arith.constant 0 : i32
    %c0_i32_1 = arith.constant 0 : i32
    return %c0_i32, %c0_i32_0 : i32, i32
  }
  func.func @transform_2(%arg0: i32) -> (i32, i32) {
    %c0_i32 = arith.constant 0 : i32
    %c0_i32_0 = arith.constant 0 : i32
    %c0_i32_1 = arith.constant 0 : i32
    return %c0_i32, %c0_i32_0 : i32, i32
  }
  func.func @transform_3(%arg0: i32) -> (i32, i32) {
    %c0_i32 = arith.constant 0 : i32
    %c0_i32_0 = arith.constant 0 : i32
    %c0_i32_1 = arith.constant 0 : i32
    return %c0_i32, %c0_i32_0 : i32, i32
  }
  func.func @transform_4(%arg0: i32) -> (i32, i32, i32) {
    %c0_i32 = arith.constant 0 : i32
    %c0_i32_0 = arith.constant 0 : i32
    %c0_i32_1 = arith.constant 0 : i32
    %c0_i32_2 = arith.constant 0 : i32
    return %c0_i32, %c0_i32_0, %c0_i32_1 : i32, i32, i32
  }
  func.func @transform_5(%arg0: i32) -> (i32, i32) {
    %c0_i32 = arith.constant 0 : i32
    %c0_i32_0 = arith.constant 0 : i32
    %c0_i32_1 = arith.constant 0 : i32
    return %c0_i32, %c0_i32_0 : i32, i32
  }
  func.func @transform_6(%arg0: i32) -> (i32, i32) {
    %c0_i32 = arith.constant 0 : i32
    %c0_i32_0 = arith.constant 0 : i32
    %c0_i32_1 = arith.constant 0 : i32
    return %c0_i32, %c0_i32_0 : i32, i32
  }
  func.func @transform_7(%arg0: i32) -> (i32, i32) {
    %c0_i32 = arith.constant 0 : i32
    %c0_i32_0 = arith.constant 0 : i32
    %c0_i32_1 = arith.constant 0 : i32
    return %c0_i32, %c0_i32_0 : i32, i32
  }
  func.func @transform_8(%arg0: i32) -> (i32, i32) {
    %c0_i32 = arith.constant 0 : i32
    %c0_i32_0 = arith.constant 0 : i32
    %c0_i32_1 = arith.constant 0 : i32
    return %c0_i32, %c0_i32_0 : i32, i32
  }
  func.func @transform_9(%arg0: i32) -> (i32, i32) {
    %c0_i32 = arith.constant 0 : i32
    %c0_i32_0 = arith.constant 0 : i32
    %c0_i32_1 = arith.constant 0 : i32
    return %c0_i32, %c0_i32_0 : i32, i32
  }
  func.func @transform_10(%arg0: i32) -> (i32, i32, i32, i32) {
    %c0_i32 = arith.constant 0 : i32
    %c0_i32_0 = arith.constant 0 : i32
    %c0_i32_1 = arith.constant 0 : i32
    %c0_i32_2 = arith.constant 0 : i32
    return %arg0, %c0_i32, %c0_i32_0, %c0_i32_1 : i32, i32, i32, i32
  }
}

</mosaic_0001>

<bundles_post_ra>
// kernel: tpu_custom_call.1
= control target key start
LH: loop header
LB: loop body
LE: loop exit
PB: predicated region body
PF: predicated region fallthrough
CT: control target
= control target key end

     0   :  { %15 = vsyncpa [#allocation5], 0  ;;  %s2114_s0 = inlined_call_operand.hbm [shape: f32[2,8,8,16], index: 0, kind: input, shape index: {}]   ;;  %s2115_s1 = inlined_call_operand.vmem [shape: bf16[16,4], index: 1, kind: input, shape index: {}]   ;;  %s2116_s2 = inlined_call_operand.vmem [shape: f32[1,4], index: 2, kind: input, shape index: {}]   ;;  %s2117_s3 = inlined_call_operand.vmem [shape: f32[1,4], index: 3, kind: input, shape index: {}]   ;;  %s2118_s4 = inlined_call_operand.vmem [shape: bf16[3,12,4], index: 4, kind: input, shape index: {}]   ;;  %s2119_s5 = inlined_call_operand.vmem [shape: f32[1,4], index: 5, kind: input, shape index: {}]   ;;  %s2120_s6 = inlined_call_operand.vmem [shape: f32[1,4], index: 6, kind: input, shape index: {}]   ;;  %s2121_s7 = inlined_call_operand.vmem [shape: bf16[4,16], index: 7, kind: input, shape index: {}]   ;;  %s2122_s8 = inlined_call_operand.vmem [shape: f32[1,16], index: 8, kind: input, shape index: {}]   ;;  %s2123_s9 = inlined_call_operand.vmem [shape: f32[1,16], index: 9, kind: input, shape index: {}]   ;;  %s2124_s10 = inlined_call_operand.hbm [shape: f32[2,8,8,16], index: 10, kind: output, shape index: {}]  }
   0x1   :  { %17 = vsyncpa [#allocation5 + $0x1], 0 }
   0x2   :  { %18 = vsyncpa [#allocation6], 0 }
   0x3   :  { %20 = vsyncpa [#allocation6 + $0x1], 0  ;;  %s1731_s13 = smov 0   ;;  %s1733_s14 = smov 0  }
   0x4   :  { %s1735_s15 = smov 0   ;;  %s1737_s16 = smov 0  }
   0x5 LB: > { %2130 = sst [smem:[#allocation10_spill]] %s1662_s15  ;;  %s1752_s17 = sadd.s32 4294967295, %s1666_s16   ;;  %s1666_s16 = sphi %s1737_s16, %s2142_s16   ;;  %s1662_s15 = sphi %s1735_s15, %s2144_s15   ;;  %s1658_s14 = sphi %s1733_s14, %s2146_s14   ;;  %s1654_s13 = sphi %s1731_s13, %s2145_s13  }
   0x6   : > { %s1333_s18 = sadd.s32 4294967294, %s1666_s16   ;;  %s1756_s19 = sadd.s32 1, %s1666_s16  }
   0x7   : > { %2131 = sst [smem:[#allocation11_spill]] %s1756_s19  ;;  %s33_s20 = sadd.s32 1, %s1662_s15 }
   0x8   : > { %s30_s21 = ssub.s32 %s1666_s16, %s1756_s19  ;;  %p40_p0 = scmp.ne.s32.totalorder %s1662_s15, %s1658_s14 }
   0x9   : > { %p31_p1 = scmp.eq.s32.totalorder %s30_s21, 0  ;;  %p41_p2 = scmp.eq.s32.totalorder %s1666_s16, 0 }
   0xa   : > { %p46_p3 = scmp.ne.s32.totalorder %s1658_s14, %s1654_s13  ;;  %p47_p4 = scmp.eq.s32.totalorder %s1752_s17, 0 }
   0xb   : > { %s1768_s22 = scalar_select %p31_p1, %s1662_s15, %s33_s20  }
   0xc   : > { %p1770_p5 = por %p41_p2, %p40_p0  ;;  %p1774_p6 = por %p47_p4, %p46_p3 }
   0xd   : > { %2132 = sst [smem:[#allocation12_spill]] %s1768_s22  ;;  %p259_p7 = scmp.eq.s32.totalorder %s1752_s17, 1 }
   0xe   : > { %s2134_s24 = scalar_select %p1774_p6, 1, 0 }
   0xf   : > { %p265_p8 = scmp.eq.s32.totalorder %s1333_s18, 1  ;;  %p1488_p10 = scmp.lt.s32.totalorder %s1666_s16, 2 }
  0x10   : > { %p1781_p11 = por %p259_p7, %p40_p0  ;;  %s312_s27 = sand.u32 1, %s1662_s15  }
  0x11   : > { %p1785_p12 = por %p265_p8, %p46_p3  ;;  %s1393_s28 = sshll.u32 %s1666_s16, 10 }
  0x12   : > { %s2135_s25 = scalar_select %p1781_p11, 1, 0 }
  0x13   : > { %s2136_s26 = scalar_select %p1785_p12, 1, 0 }
  0x14   : > { %s1336_s29 = sshll.u32 %s312_s27, 6  ;;  %s1794_s12 = scalar_lea.hbm %s2114_s0, %s1393_s28 }
  0x15   : > { %s316_s18 = scalar_lea.vmem [#allocation4], %s1336_s29  ;;  %p1798_p13 = pnand %p1488_p10, %p1770_p5 }
  0x16   : > { %s323_s20 = sshll.u32 %s316_s18, 4  ;;  %s1804_s22 = scalar_lea.sflag [#allocation5], %s312_s27  ;;  %s1802_s20 = int_to_ptr.vmem [resolvable:$true] %s323_s20 }
  0x17   : > { %s1574_s15 = scalar_lea.hbm %s1794_s12, 1024  ;;  %p1576_p1 = pneg %p1798_p13 }
  0x18   : > { %p1575_p0 = scmp.ne.s32.totalorder %s1794_s12, %s1574_s15  ;;  %s1579_s29 = scalar_lea.hbm %s2114_s0, 2048 }
  0x19   : > { %p1580_p4 = scmp.lt.s32.totalorder %s1794_s12, %s2114_s0  ;;  %p1581_p5 = scmp.lt.s32.totalorder %s1579_s29, %s1574_s15 }
  0x1a   : > { %p1577_p2 = pnand %p1576_p1, %p1575_p0 }
  0x1b   : > { %p1582_p7 = por %p1581_p5, %p1580_p4 }
  0x1c   : > { %p1578_p3 = pneg %p1577_p2 }
  0x1e   : > { %p1583_p8 = pnand %p1582_p7, %p1578_p3 }
  0x20   : > { %1586 = shalt.err (!%p1583_p8)
}
  0x21   : > { %s1587_s27 = scalar_lea.vmem %s1802_s20, 1024  ;;  %s1668_s18 = smov [#allocation4]  }
  0x22   : > { %p1588_p10 = scmp.ne.s32.totalorder %s1802_s20, %s1587_s27  ;;  %s1592_s19 = sshll.u32 %s1668_s18, 4  ;;  %s1593_s19 = int_to_ptr.vmem [resolvable:$false] %s1592_s19 }
  0x23   : > { %s1594_s28 = scalar_lea.vmem %s1593_s19, 2048  ;;  %p1595_p2 = scmp.lt.s32.totalorder %s1802_s20, %s1593_s19 }
  0x24   : > { %p1590_p9 = pnand %p1588_p10, %p1576_p1  ;;  %p1596_p12 = scmp.lt.s32.totalorder %s1594_s28, %s1587_s27 }
  0x26   : > { %p1591_p0 = pneg %p1590_p9  ;;  %p1597_p11 = por %p1596_p12, %p1595_p2 }
  0x28   : > { %p1598_p6 = pnand %p1597_p11, %p1591_p0 }
  0x2a   : > { %1601 = shalt.err (!%p1598_p6)
}
  0x2b   : > { %s1669_s15 = smov 128   ;;  %s1670_s30 = smov 8  }
  0x2c   : > { %1483 = dma.hbm_to_vmem [thread:$0]  (!%p1798_p13), %s1794_s12, 1024, %s1802_s20, %s1804_s22, %s1669_s15, %s1669_s15, %s1670_s30  }
  0x2d   : > { %p1339_p9 = scmp.ge.s32.totalorder %s1666_s16, 1  ;;  %p331_p1 = scmp.lt.s32.totalorder %s1666_s16, 3 }
  0x2f   : > { %p332_p3 = pnand %p1339_p9, %p331_p1 }
  0x30   : > { %s1828_s19 = sand.u32 (!%p332_p3), 1, %s1658_s14   ;;  %p2138_p6 = scmp.ne.s32.totalorder (!%p332_p3), %s2134_s24, 0 }
  0x31   : > { %335 = sbr.rel (%p332_p3) target bundleno = 867 (0x363), region = 60  ;;  %s1340_s29 = sshll.u32 (!%p332_p3), %s1828_s19, 6 }
  0x32   : > { %s338_s23 = scalar_lea.sflag (!%p332_p3), [#allocation5], %s1828_s19  ;;  %s341_s11 = scalar_lea.vmem (!%p332_p3), [#allocation4], %s1340_s29 }
  0x36   : > { %1645 = dma.done.wait (%p2138_p6), %s338_s23, 1024  }
  0x37   : > { %1647 = vsyncadd (%p2138_p6), %s338_s23, 4294966272  ;;  %v1558_v0 = vld [vmem:[%s2115_s1] sm:$0xff]   ;;  %v1841_v1 = vld [vmem:[%s341_s11] sm:$0xff]  ;;  %vm399_vm0 = vcmask 130048   ;;  %v515_v22 = vlaneseq  ;;  %s1671_s18 = smov 4   ;;  %vm642_vm3 = vcmask 93184  }
  0x38   : > { %v1843_v2 = vld [vmem:[%s341_s11 + $0x8] sm:$0xff]  ;;  %v1845_v3 = vld [vmem:[%s341_s11 + $0x10] sm:$0xff]  ;;  %1420 = vmatprep.subr.bf16.mxu0 %v1558_v0  ;;  %1470 = vmatprep.subr.bf16.mxu1 %v1558_v0  ;;  %v1849_v5 = vld [vmem:[%s341_s11 + $0x18] sm:$0xff]  ;;  %s1672_s28 = smov 8   ;;  %vm702_vm4 = vcmask 1045504   ;;  %vm615_vm5 = vcmask 31744  }
  0x39   : > { %v387_v4 = vpack.c.bf16 %v1843_v2, %v1841_v1  ;;  %v1851_v6 = vld [vmem:[%s341_s11 + $0x20] sm:$0xff]  ;;  %v1853_v7 = vld [vmem:[%s341_s11 + $0x28] sm:$0xff]  ;;  %1421 = vmatpush3.bf16.msra.mxu0 %v1558_v0  ;;  %1471 = vmatpush3.bf16.msra.mxu1 %v1558_v0  ;;  %v388_v8 = vpack.c.bf16 %v1849_v5, %v1845_v3  ;;  %v1859_v10 = vld [vmem:[%s341_s11 + $0x30] sm:$0xff]  ;;  %v1875_v36 = vshrl.u32 %v515_v22, 7  ;;  %vm624_vm6 = vcmask 64512   ;;  %s2039_s12 = scalar_lea.vmem [#allocation7], %s1340_s29 }
  0x3a   : > { %v389_v9 = vpack.c.bf16 %v1853_v7, %v1851_v6  ;;  %v1861_v11 = vld [vmem:[%s341_s11 + $0x38] sm:$0xff]  ;;  %vm689_vm7 = vcmask 97280   ;;  %vm1123_vm8 = vcmask 1041408   ;;  %s1394_s29 = sshll.u32 %s1752_s17, 10  ;;  %s1260_s24 = sshll.u32 %s2039_s12, 4  ;;  %s2068_s24 = int_to_ptr.vmem [resolvable:$true] %s1260_s24 }
  0x3b   : > { %1422 = vmatprep.mubr.msk.bf16.mxu0 %vm399_vm0, %v387_v4  ;;  %v390_v12 = vpack.c.bf16 %v1861_v11, %v1859_v10  ;;  %v1347_v13 = vld [vmem:[%s2116_s2] ss:$0 sm:$0xff]  ;;  %vm517_vm1 = vcmp.eq.s32.totalorder %v1875_v36, 0  ;;  %vm534_vm2 = vcmp.eq.s32.totalorder %v1875_v36, 7  ;;  %s2064_s27 = scalar_lea.hbm %s2124_s10, %s1394_s29  ;;  %s1247_s17 = scalar_lea.sflag [#allocation6], %s1828_s19 }
  0x3c   : > { %1426 = vmatprep.mubr.msk.bf16.mxu1 %vm399_vm0, %v389_v9  ;;  %1423 = vmatmul.mubr.msk.bf16.vlgmr.msra.gmra.mxu0 %vm399_vm0, %v388_v8  ;;  %v1348_v17 = vld [vmem:[%s2117_s3] ss:$0 sm:$0xff]  ;;  %p2139_p12 = scmp.ne.s32.totalorder %s2135_s25, 0  ;;  %s1674_s15 = smov [#allocation7]  }
  0x3d   : > { %1427 = vmatmul.mubr.msk.bf16.vlgmr.msra.gmra.mxu1 %vm399_vm0, %v390_v12  ;;  %s1606_s30 = sshll.u32 %s1674_s15, 4  ;;  %s1607_s30 = int_to_ptr.vmem [resolvable:$false] %s1606_s30 }
  0x3e   : > { %s1608_s23 = scalar_lea.vmem %s1607_s30, 2048  ;;  %p1609_p5 = scmp.lt.s32.totalorder %s2068_s24, %s1607_s30 }
  0xfc   : > { %v1424_v14 = vpop.f32.mrf.mxu0 }
  0xfd   : > { %v1428_v15 = vpop.f32.mrf.mxu1  ;;  %v486_v16 = vmul.f32 %v1424_v14, %v1347_v13 }
  0xfe   : > { %v446_v18 = vpop.f32.mrf.mxu0  ;;  %v490_v28 = vmul.f32 %v1428_v15, %v1347_v13 }
  0xff   : > { %v462_v19 = vpop.f32.mrf.mxu1  ;;  %v484_v20 = vmul.f32 %v1347_v13, %v446_v18  ;;  %v501_v23 = vadd.f32 %v1348_v17, %v486_v16 }
 0x100   : > { %v488_v21 = vmul.f32 %v1347_v13, %v462_v19  ;;  %v1425_v24 = vpop.f32.mrf.mxu0  ;;  %v505_v41 = vadd.f32 %v1348_v17, %v490_v28  ;;  %v1563_v28 = vld [vmem:[%s2118_s4 + $0x8] sm:$0x3f]  }
 0x101   : > { %v1429_v25 = vpop.f32.mrf.mxu1  ;;  %v499_v26 = vadd.f32 %v1348_v17, %v484_v20  ;;  %v487_v27 = vmul.f32 %v1425_v24, %v1347_v13  ;;  %v509_v37 = vmax.f32 %v501_v23, 0.0  ;;  %1473 = vmatprep.subr.msk.bf16.mxu0 %vm702_vm4, %v1563_v28 }
 0x102   : > { %v503_v29 = vadd.f32 %v1348_v17, %v488_v21  ;;  %v449_v30 = vpop.f32.mrf.mxu0  ;;  %v491_v31 = vmul.f32 %v1429_v25, %v1347_v13  ;;  %v513_v55 = vmax.f32 %v505_v41, 0.0  ;;  %v1673_v21 = vmov 0  }
 0x103   : > { %v465_v32 = vpop.f32.mrf.mxu1  ;;  %v507_v33 = vmax.f32 %v499_v26, 0.0  ;;  %v502_v34 = vadd.f32 %v1348_v17, %v487_v27  ;;  %v485_v35 = vmul.f32 %v1347_v13, %v449_v30  ;;  %v520_v47 = vrot.slane %v509_v37, 7  ;;  %651 = vst.msk [vmem:[#allocation2] sm:$0xf] %vm642_vm3, %v1673_v21  ;;  %653 = vst.msk [vmem:[#allocation2 + $0x24] sm:$0xf] %vm642_vm3, %v1673_v21 }
 0x104   : > { %v489_v38 = vmul.f32 %v1347_v13, %v465_v32  ;;  %v511_v42 = vmax.f32 %v503_v29, 0.0  ;;  %v506_v43 = vadd.f32 %v1348_v17, %v491_v31  ;;  %v537_v60 = vrot.slane %v509_v37, 1  ;;  %v1564_v29 = vld [vmem:[%s2118_s4 + $0x10] sm:$0x3f]  }
 0x105   : > { %v510_v39 = vmax.f32 %v502_v34, 0.0  ;;  %v500_v40 = vadd.f32 %v1348_v17, %v485_v35  ;;  %v535_v46 = vrot.slane %v507_v33, 1  ;;  %v518_v48 = vrot.slane %v507_v33, 7 }
 0x106   : > { %v504_v44 = vadd.f32 %v1348_v17, %v489_v38  ;;  %v522_v49 = vrot.slane %v511_v42, 7  ;;  %v514_v56 = vmax.f32 %v506_v43, 0.0  ;;  %v528_v9 = vsel %vm517_vm1, 0.0, %v520_v47  ;;  %v1559_v17 = vld [vmem:[%s2118_s4] sm:$0x3f]  }
 0x107   : > { %v508_v45 = vmax.f32 %v500_v40, 0.0  ;;  %v521_v51 = vrot.slane %v510_v39, 7  ;;  %v543_v58 = vsel %vm534_vm2, 0.0, %v535_v46  ;;  %v1533_v62 = vpack.i.bf16 %v510_v39, %v509_v37  ;;  %1472 = vmatprep.subr.msk.bf16.mxu1 %vm702_vm4, %v1559_v17 }
 0x108   : > { %v512_v50 = vmax.f32 %v504_v44, 0.0  ;;  %v526_v63 = vsel %vm517_vm1, 0.0, %v518_v48  ;;  %v538_v4 = vrot.slane %v510_v39, 1  ;;  %v1896_v12 = vsel %vm517_vm1, 0.0, %v522_v49 }
 0x109   : > { %v519_v52 = vrot.slane %v508_v45, 7  ;;  %v1528_v53 = vpack.i.bf16 %v508_v45, %v507_v33  ;;  %v536_v54 = vrot.slane %v508_v45, 1  ;;  %v1890_v8 = vsel %vm517_vm1, 0.0, %v521_v51 }
 0x10a   : > { %v523_v57 = vrot.slane %v512_v50, 7  ;;  %v539_v13 = vrot.slane %v511_v42, 1  ;;  %v524_v15 = vrot.slane %v513_v55, 7  ;;  %v525_v16 = vrot.slane %v514_v56, 7 }
 0x10b   : > { %1529 = vrot.lane.b32.xlu0 %v1528_v53, %s1671_s18  ;;  %v544_v59 = vsel %vm534_vm2, 0.0, %v536_v54  ;;  %v527_v0 = vsel %vm517_vm1, 0.0, %v519_v52  ;;  %v545_v18 = vsel %vm534_vm2, 0.0, %v537_v60  ;;  %v1543_v22 = vpack.i.bf16 %v512_v50, %v511_v42 }
 0x10c   : > { %v1538_v61 = vpack.i.bf16 %v544_v59, %v543_v58  ;;  %v1901_v14 = vsel %vm517_vm1, 0.0, %v523_v57  ;;  %v1911_v19 = vsel %vm517_vm1, 0.0, %v524_v15  ;;  %v1915_v20 = vsel %vm517_vm1, 0.0, %v525_v16 }
 0x10d   : > { %v540_v23 = vrot.slane %v512_v50, 1  ;;  %v541_v24 = vrot.slane %v513_v55, 1  ;;  %v704_v25 = vsel %vm702_vm4, %v1559_v17, 0  ;;  %v546_v26 = vsel %vm534_vm2, 0.0, %v538_v4 }
 0x10e   : > { %1539 = vrot.lane.b32.xlu1 %v1538_v61, %s1672_s28  ;;  %v547_v27 = vsel %vm534_vm2, 0.0, %v539_v13  ;;  %1431 = vmatpush3.bf16.msra.mxu1 %v704_v25  ;;  %v836_v33 = vsel %vm702_vm4, %v1563_v28, 0  ;;  %v1941_v34 = vsel %vm702_vm4, %v1564_v29, 0  ;;  %v542_v37 = vrot.slane %v514_v56, 1 }
 0x10f   : > { %1534 = vrot.lane.b32.xlu0 %v1533_v62, %s1671_s18  ;;  %v1548_v30 = vpack.i.bf16 %v547_v27, %v546_v26  ;;  %v548_v31 = vsel %vm534_vm2, 0.0, %v540_v23  ;;  %v549_v32 = vsel %vm534_vm2, 0.0, %v541_v24  ;;  %1441 = vmatpush3.bf16.msra.mxu0 %v836_v33 }
 0x110   : > { %v1553_v35 = vpack.i.bf16 %v549_v32, %v548_v31  ;;  %1474 = vmatprep.subr.msk.bf16.mxu1 %vm702_vm4, %v1564_v29  ;;  %v550_v38 = vsel %vm534_vm2, 0.0, %v542_v37 }
 0x112   : > { %595 = vrot.lane.b32.xlu1 %v545_v18, %s1672_s28 }
 0x113   : > { %1544 = vrot.lane.b32.xlu0 %v1543_v22, %s1671_s18 }
 0x116   : > { %571 = vrot.lane.b32.xlu1 %v513_v55, %s1671_s18 }
 0x117   : > { %1549 = vrot.lane.b32.xlu0 %v1548_v30, %s1672_s28 }
 0x11a   : > { %1554 = vrot.lane.b32.xlu1 %v1553_v35, %s1672_s28 }
 0x11b   : > { %573 = vrot.lane.b32.xlu0 %v514_v56, %s1671_s18  ;;  %s1602_s18 = scalar_lea.vmem %s2068_s24, 1024 }
 0x11c   : > { %p1603_p11 = scmp.ne.s32.totalorder %s2068_s24, %s1602_s18  ;;  %p1610_p7 = scmp.lt.s32.totalorder %s1608_s23, %s1602_s18 }
 0x11e   : > { %605 = vrot.lane.b32.xlu1 %v550_v38, %s1672_s28  ;;  %p1604_p13 = pnand %p1603_p11, %p2139_p12  ;;  %p1611_p8 = por %p1610_p7, %p1609_p5 }
 0x120   : > { %p1605_p4 = pneg %p1604_p13 }
 0x122   : > { %p1612_p10 = pnand %p1611_p8, %p1605_p4 }
 0x17d   : > { %v1530_v39 = vpop.permute.xlu0 %1529 }
 0x17e   : > { %v1532_v40 = vunpack.i.h.bf16 %v1530_v39  ;;  %v1531_v41 = vunpack.i.l.bf16 %v1530_v39 }
 0x180   : > { %v1540_v42 = vpop.permute.xlu1 %1539  ;;  %v616_v46 = vsel %vm615_vm5, %v526_v63, %v1531_v41  ;;  %v617_v47 = vsel %vm615_vm5, %v527_v0, %v1532_v40  ;;  %v1110_v41 = vld [vmem:[%s2121_s7] sm:$0x3] }
 0x181   : > { %v1542_v43 = vunpack.i.h.bf16 %v1540_v42  ;;  %v1541_v44 = vunpack.i.l.bf16 %v1540_v42  ;;  %v1535_v45 = vpop.permute.xlu0 %1534  ;;  %1475 = vmatprep.subr.msk.bf16.mxu0 %vm1123_vm8, %v1110_v41  ;;  %v1125_v42 = vsel %vm1123_vm8, %v1110_v41, 0 }
 0x182   : > { %v1536_v48 = vunpack.i.l.bf16 %v1535_v45  ;;  %v1537_v57 = vunpack.i.h.bf16 %v1535_v45 }
 0x183   : > { %v625_v49 = vsel %vm624_vm6, %v616_v46, %v1541_v44  ;;  %v626_v36 = vsel %vm624_vm6, %v617_v47, %v1542_v43 }
 0x184   : > { %v633_v50 = vpack.c.bf16 %v625_v49, %v625_v49  ;;  %v634_v51 = vpack.c.bf16 %v626_v36, %v626_v36  ;;  %v618_v52 = vsel %vm615_vm5, %v528_v9, %v1536_v48  ;;  %v596_v53 = vpop.permute.xlu1 %595  ;;  %v619_v0 = vsel %vm615_vm5, %v1890_v8, %v1537_v57 }
 0x185   : > { %v627_v54 = vsel %vm624_vm6, %v618_v52, %v596_v53  ;;  %v1545_v55 = vpop.permute.xlu0 %1544 }
 0x186   : > { %643 = vst.msk [vmem:[#allocation2 + $0x4] sm:$0xf] %vm642_vm3, %v633_v50  ;;  %644 = vst.msk [vmem:[#allocation2 + $0x8] sm:$0xf] %vm642_vm3, %v634_v51  ;;  %v635_v56 = vpack.c.bf16 %v627_v54, %v627_v54  ;;  %v1546_v58 = vunpack.i.l.bf16 %v1545_v55  ;;  %v1547_v61 = vunpack.i.h.bf16 %v1545_v55 }
 0x188   : > { %645 = vst.msk [vmem:[#allocation2 + $0xc] sm:$0xf] %vm642_vm3, %v635_v56  ;;  %v572_v59 = vpop.permute.xlu1 %571  ;;  %v620_v4 = vsel %vm615_vm5, %v1896_v12, %v1546_v58  ;;  %v621_v24 = vsel %vm615_vm5, %v1901_v14, %v1547_v61 }
 0x189   : > { %v1550_v60 = vpop.permute.xlu0 %1549  ;;  %v622_v8 = vsel %vm615_vm5, %v1911_v19, %v572_v59 }
 0x18a   : > { %v1552_v62 = vunpack.i.h.bf16 %v1550_v60  ;;  %v1551_v63 = vunpack.i.l.bf16 %v1550_v60 }
 0x18c   : > { %v628_v9 = vsel %vm624_vm6, %v619_v0, %v1551_v63  ;;  %v629_v13 = vsel %vm624_vm6, %v620_v4, %v1552_v62  ;;  %v1555_v15 = vpop.permute.xlu1 %1554 }
 0x18d   : > { %v636_v16 = vpack.c.bf16 %v628_v9, %v628_v9  ;;  %v637_v17 = vpack.c.bf16 %v629_v13, %v629_v13  ;;  %v1557_v18 = vunpack.i.h.bf16 %v1555_v15  ;;  %v1556_v21 = vunpack.i.l.bf16 %v1555_v15  ;;  %v574_v22 = vpop.permute.xlu0 %573  ;;  %v1560_v23 = vld [vmem:[#allocation2] sm:$0xff]  }
 0x18e   : > { %v1561_v25 = vld [vmem:[#allocation2 + $0x4] sm:$0xff]   ;;  %1432 = vmatprep.mubr.msk.bf16.mxu1 %vm689_vm7, %v1560_v23  ;;  %v623_v14 = vsel %vm615_vm5, %v1915_v20, %v574_v22 }
 0x18f   : > { %646 = vst.msk [vmem:[#allocation2 + $0x10] sm:$0xf] %vm642_vm3, %v636_v16  ;;  %647 = vst.msk [vmem:[#allocation2 + $0x14] sm:$0xf] %vm642_vm3, %v637_v17  ;;  %v631_v12 = vsel %vm624_vm6, %v622_v8, %v1557_v18  ;;  %v630_v26 = vsel %vm624_vm6, %v621_v24, %v1556_v21  ;;  %v1562_v27 = vld [vmem:[#allocation2 + $0x8] sm:$0xff]   ;;  %1442 = vmatprep.mubr.msk.bf16.mxu0 %vm689_vm7, %v1561_v25 }
 0x190   : > { %v639_v28 = vpack.c.bf16 %v631_v12, %v631_v12  ;;  %v638_v29 = vpack.c.bf16 %v630_v26, %v630_v26  ;;  %v606_v30 = vpop.permute.xlu1 %605  ;;  %1433 = vmatmul.mubr.msk.bf16.vlgmr.msra.gmra.mxu1 %vm689_vm7, %v1562_v27  ;;  %v1569_v20 = vld [vmem:[#allocation2 + $0x8] sm:$0xff]  }
 0x191   : > { %v632_v19 = vsel %vm624_vm6, %v623_v14, %v606_v30  ;;  %1451 = vmatpush3.bf16.msra.mxu1 %v1941_v34 }
 0x192   : > { %649 = vst.msk [vmem:[#allocation2 + $0x1c] sm:$0xf] %vm642_vm3, %v639_v28  ;;  %648 = vst.msk [vmem:[#allocation2 + $0x18] sm:$0xf] %vm642_vm3, %v638_v29  ;;  %v640_v31 = vpack.c.bf16 %v632_v19, %v632_v19 }
 0x194   : > { %650 = vst.msk [vmem:[#allocation2 + $0x20] sm:$0xf] %vm642_vm3, %v640_v31 }
 0x196   : > { %v1565_v32 = vld [vmem:[#allocation2 + $0x10] sm:$0xff]  }
 0x197   : > { %v1566_v33 = vld [vmem:[#allocation2 + $0xc] sm:$0xff]   ;;  %1436 = vmatprep.mubr.msk.bf16.mxu1 %vm689_vm7, %v1565_v32 }
 0x198   : > { %1443 = vmatmul.mubr.msk.bf16.vlgmr.msra.gmra.mxu0 %vm689_vm7, %v1566_v33  ;;  %v1571_v34 = vld [vmem:[#allocation2 + $0x10] sm:$0xff]  }
 0x199   : > { %v1567_v35 = vld [vmem:[#allocation2 + $0x18] sm:$0xff]   ;;  %1461 = vmatpush3.bf16.msra.mxu0 %v1125_v42 }
 0x19a   : > { %v1568_v37 = vld [vmem:[#allocation2 + $0x14] sm:$0xff]   ;;  %1437 = vmatmul.mubr.msk.bf16.gmra.mxu1 %vm689_vm7, %v1567_v35  ;;  %v1380_v35 = vld [vmem:[%s2119_s5] ss:$0 sm:$0xff] }
 0x19b   : > { %1446 = vmatprep.mubr.msk.bf16.mxu0 %vm689_vm7, %v1568_v37  ;;  %1452 = vmatprep.mubr.msk.bf16.mxu1 %vm689_vm7, %v1569_v20  ;;  %v1570_v38 = vld [vmem:[#allocation2 + $0x1c] sm:$0xff]  }
 0x19c   : > { %v1572_v39 = vld [vmem:[#allocation2 + $0x18] sm:$0xff]   ;;  %v1573_v40 = vld [vmem:[#allocation2 + $0x20] sm:$0xff]  }
 0x1a0   : > { %1447 = vmatmul.mubr.msk.bf16.gmra.mxu0 %vm689_vm7, %v1570_v38 }
 0x1a2   : > { %1453 = vmatmul.mubr.msk.bf16.vlgmr.msra.gmra.mxu1 %vm689_vm7, %v1571_v34 }
 0x1a3   : > { %1456 = vmatprep.mubr.msk.bf16.mxu1 %vm689_vm7, %v1572_v39 }
 0x1aa   : > { %1457 = vmatmul.mubr.msk.bf16.gmra.mxu1 %vm689_vm7, %v1573_v40 }
 0x250   : > { %v1434_v43 = vpop.f32.mrf.mxu1 }
 0x251   : > { %773 = vst.msk [vmem:[#allocation3 + $0x10] sm:$0xff] %vm615_vm5, %v1434_v43 }
 0x252   : > { %v740_v44 = vpop.f32.mrf.mxu1 }
 0x253   : > { %771 = vst.msk [vmem:[#allocation3] sm:$0xff] %vm615_vm5, %v740_v44 }
 0x254   : > { %v1435_v45 = vpop.f32.mrf.mxu1 }
 0x255   : > { %774 = vst.msk [vmem:[#allocation3 + $0x18] sm:$0xff] %vm615_vm5, %v1435_v45 }
 0x256   : > { %v743_v46 = vpop.f32.mrf.mxu1 }
 0x257   : > { %772 = vst.msk [vmem:[#allocation3 + $0x8] sm:$0xff] %vm615_vm5, %v743_v46  ;;  %v1381_v46 = vld [vmem:[%s2120_s6] ss:$0 sm:$0xff] }
 0x258   : > { %v781_v47 = vld [vmem:[#allocation3 + $0x10] sm:$0xff]  ;;  %v1444_v48 = vpop.f32.mrf.mxu0 }
 0x259   : > { %v905_v49 = vadd.f32 %v1444_v48, %v781_v47 }
 0x25a   : > { %v779_v36 = vld [vmem:[#allocation3] sm:$0xff]  ;;  %v872_v50 = vpop.f32.mrf.mxu0  ;;  %v1438_v51 = vpop.f32.mrf.mxu1 }
 0x25b   : > { %913 = vst.msk [vmem:[#allocation3 + $0x10] sm:$0xff] %vm615_vm5, %v905_v49  ;;  %v903_v52 = vadd.f32 %v872_v50, %v779_v36  ;;  %777 = vst.msk [vmem:[#allocation3 + $0x30] sm:$0xff] %vm615_vm5, %v1438_v51 }
 0x25c   : > { %v782_v53 = vld [vmem:[#allocation3 + $0x18] sm:$0xff]  ;;  %v1445_v54 = vpop.f32.mrf.mxu0  ;;  %v756_v55 = vpop.f32.mrf.mxu1 }
 0x25d   : > { %911 = vst.msk [vmem:[#allocation3] sm:$0xff] %vm615_vm5, %v903_v52  ;;  %v906_v56 = vadd.f32 %v1445_v54, %v782_v53  ;;  %775 = vst.msk [vmem:[#allocation3 + $0x20] sm:$0xff] %vm615_vm5, %v756_v55 }
 0x25e   : > { %v780_v57 = vld [vmem:[#allocation3 + $0x8] sm:$0xff]  ;;  %v875_v58 = vpop.f32.mrf.mxu0  ;;  %v1439_v59 = vpop.f32.mrf.mxu1 }
 0x25f   : > { %914 = vst.msk [vmem:[#allocation3 + $0x18] sm:$0xff] %vm615_vm5, %v906_v56  ;;  %v904_v60 = vadd.f32 %v875_v58, %v780_v57  ;;  %778 = vst.msk [vmem:[#allocation3 + $0x38] sm:$0xff] %vm615_vm5, %v1439_v59 }
 0x260   : > { %v1448_v61 = vpop.f32.mrf.mxu0  ;;  %v759_v62 = vpop.f32.mrf.mxu1 }
 0x261   : > { %912 = vst.msk [vmem:[#allocation3 + $0x8] sm:$0xff] %vm615_vm5, %v904_v60  ;;  %776 = vst.msk [vmem:[#allocation3 + $0x28] sm:$0xff] %vm615_vm5, %v759_v62 }
 0x262   : > { %v785_v63 = vld [vmem:[#allocation3 + $0x30] sm:$0xff]  ;;  %v888_v0 = vpop.f32.mrf.mxu0  ;;  %v1454_v9 = vpop.f32.mrf.mxu1 }
 0x263   : > { %v921_v4 = vld [vmem:[#allocation3 + $0x10] sm:$0xff]  ;;  %v909_v13 = vadd.f32 %v1448_v61, %v785_v63 }
 0x264   : > { %v1046_v15 = vadd.f32 %v1454_v9, %v921_v4  ;;  %v783_v16 = vld [vmem:[#allocation3 + $0x20] sm:$0xff]  ;;  %v1449_v17 = vpop.f32.mrf.mxu0  ;;  %v1013_v21 = vpop.f32.mrf.mxu1 }
 0x265   : > { %v919_v18 = vld [vmem:[#allocation3] sm:$0xff]  ;;  %917 = vst.msk [vmem:[#allocation3 + $0x30] sm:$0xff] %vm615_vm5, %v909_v13  ;;  %v907_v22 = vadd.f32 %v888_v0, %v783_v16 }
 0x266   : > { %1054 = vst.msk [vmem:[#allocation3 + $0x10] sm:$0xff] %vm615_vm5, %v1046_v15  ;;  %v1044_v23 = vadd.f32 %v1013_v21, %v919_v18  ;;  %v786_v24 = vld [vmem:[#allocation3 + $0x38] sm:$0xff]  ;;  %v1455_v25 = vpop.f32.mrf.mxu1  ;;  %v891_v28 = vpop.f32.mrf.mxu0 }
 0x267   : > { %v922_v8 = vld [vmem:[#allocation3 + $0x18] sm:$0xff]  ;;  %915 = vst.msk [vmem:[#allocation3 + $0x20] sm:$0xff] %vm615_vm5, %v907_v22  ;;  %v910_v12 = vadd.f32 %v1449_v17, %v786_v24 }
 0x268   : > { %1052 = vst.msk [vmem:[#allocation3] sm:$0xff] %vm615_vm5, %v1044_v23  ;;  %v1047_v26 = vadd.f32 %v1455_v25, %v922_v8  ;;  %v784_v27 = vld [vmem:[#allocation3 + $0x28] sm:$0xff]  ;;  %v1016_v14 = vpop.f32.mrf.mxu1 }
 0x269   : > { %v920_v29 = vld [vmem:[#allocation3 + $0x8] sm:$0xff]  ;;  %918 = vst.msk [vmem:[#allocation3 + $0x38] sm:$0xff] %vm615_vm5, %v910_v12  ;;  %v908_v30 = vadd.f32 %v891_v28, %v784_v27  ;;  %v1386_v27 = vld [vmem:[%s2122_s8] ss:$0 sm:$0xff] }
 0x26a   : > { %1055 = vst.msk [vmem:[#allocation3 + $0x18] sm:$0xff] %vm615_vm5, %v1047_v26  ;;  %v1045_v19 = vadd.f32 %v1016_v14, %v920_v29  ;;  %v1458_v31 = vpop.f32.mrf.mxu1  ;;  %v1387_v29 = vld [vmem:[%s2123_s9] ss:$0 sm:$0xff] }
 0x26b   : > { %916 = vst.msk [vmem:[#allocation3 + $0x28] sm:$0xff] %vm615_vm5, %v908_v30 }
 0x26c   : > { %1053 = vst.msk [vmem:[#allocation3 + $0x8] sm:$0xff] %vm615_vm5, %v1045_v19  ;;  %v925_v32 = vld [vmem:[#allocation3 + $0x30] sm:$0xff]  ;;  %v1029_v33 = vpop.f32.mrf.mxu1 }
 0x26d   : > { %v1050_v20 = vadd.f32 %v1458_v31, %v925_v32  ;;  %v1062_v37 = vld [vmem:[#allocation3 + $0x10] sm:$0xff] }
 0x26e   : > { %v923_v38 = vld [vmem:[#allocation3 + $0x20] sm:$0xff]  ;;  %v1459_v34 = vpop.f32.mrf.mxu1  ;;  %v1077_v44 = vmul.f32 %v1380_v35, %v1062_v37 }
 0x26f   : > { %v1060_v39 = vld [vmem:[#allocation3] sm:$0xff]  ;;  %1058 = vst.msk [vmem:[#allocation3 + $0x30] sm:$0xff] %vm615_vm5, %v1050_v20  ;;  %v1048_v40 = vadd.f32 %v1029_v33, %v923_v38 }
 0x270   : > { %v1075_v41 = vmul.f32 %v1380_v35, %v1060_v39  ;;  %v926_v42 = vld [vmem:[#allocation3 + $0x38] sm:$0xff]  ;;  %v1032_v49 = vpop.f32.mrf.mxu1  ;;  %v1092_v54 = vadd.f32 %v1381_v46, %v1077_v44 }
 0x271   : > { %v1063_v43 = vld [vmem:[#allocation3 + $0x18] sm:$0xff]  ;;  %1056 = vst.msk [vmem:[#allocation3 + $0x20] sm:$0xff] %vm615_vm5, %v1048_v40  ;;  %v1051_v45 = vadd.f32 %v1459_v34, %v926_v42 }
 0x272   : > { %v1078_v47 = vmul.f32 %v1380_v35, %v1063_v43  ;;  %v924_v48 = vld [vmem:[#allocation3 + $0x28] sm:$0xff]  ;;  %v1090_v52 = vadd.f32 %v1381_v46, %v1075_v41  ;;  %v1100_v60 = vmax.f32 %v1092_v54, 0.0 }
 0x273   : > { %v1061_v36 = vld [vmem:[#allocation3 + $0x8] sm:$0xff]  ;;  %1059 = vst.msk [vmem:[#allocation3 + $0x38] sm:$0xff] %vm615_vm5, %v1051_v45  ;;  %v1049_v50 = vadd.f32 %v1032_v49, %v924_v48 }
 0x274   : > { %v1076_v51 = vmul.f32 %v1380_v35, %v1061_v36  ;;  %v1093_v53 = vadd.f32 %v1381_v46, %v1078_v47  ;;  %v1098_v57 = vmax.f32 %v1090_v52, 0.0 }
 0x275   : > { %1057 = vst.msk [vmem:[#allocation3 + $0x28] sm:$0xff] %vm615_vm5, %v1049_v50 }
 0x276   : > { %v1091_v55 = vadd.f32 %v1381_v46, %v1076_v51  ;;  %v1101_v56 = vmax.f32 %v1093_v53, 0.0  ;;  %v1066_v59 = vld [vmem:[#allocation3 + $0x30] sm:$0xff] }
 0x277   : > { %v1081_v9 = vmul.f32 %v1380_v35, %v1066_v59 }
 0x278   : > { %v1099_v58 = vmax.f32 %v1091_v55, 0.0  ;;  %v1064_v61 = vld [vmem:[#allocation3 + $0x20] sm:$0xff]  ;;  %v1107_v0 = vpack.c.bf16 %v1101_v56, %v1100_v60 }
 0x279   : > { %v1079_v63 = vmul.f32 %v1380_v35, %v1064_v61  ;;  %v1096_v21 = vadd.f32 %v1381_v46, %v1081_v9 }
 0x27a   : > { %v1106_v62 = vpack.c.bf16 %v1099_v58, %v1098_v57  ;;  %v1067_v4 = vld [vmem:[#allocation3 + $0x38] sm:$0xff] }
 0x27b   : > { %v1082_v13 = vmul.f32 %v1380_v35, %v1067_v4  ;;  %v1094_v17 = vadd.f32 %v1381_v46, %v1079_v63  ;;  %v1104_v25 = vmax.f32 %v1096_v21, 0.0 }
 0x27c   : > { %1462 = vmatprep.mubr.msk.bf16.mxu0 %vm615_vm5, %v1106_v62  ;;  %v1065_v15 = vld [vmem:[#allocation3 + $0x28] sm:$0xff] }
 0x27d   : > { %1463 = vmatmul.mubr.msk.bf16.vlgmr.msra.gmra.mxu0 %vm615_vm5, %v1107_v0  ;;  %v1080_v16 = vmul.f32 %v1380_v35, %v1065_v15  ;;  %v1097_v18 = vadd.f32 %v1381_v46, %v1082_v13  ;;  %v1102_v24 = vmax.f32 %v1094_v17, 0.0 }
 0x27f   : > { %v1095_v22 = vadd.f32 %v1381_v46, %v1080_v16  ;;  %v1105_v23 = vmax.f32 %v1097_v18, 0.0 }
 0x281   : > { %v1103_v8 = vmax.f32 %v1095_v22, 0.0  ;;  %v1109_v26 = vpack.c.bf16 %v1105_v23, %v1104_v25 }
 0x283   : > { %v1108_v12 = vpack.c.bf16 %v1103_v8, %v1102_v24 }
 0x285   : > { %1466 = vmatprep.mubr.msk.bf16.mxu0 %vm615_vm5, %v1108_v12 }
 0x286   : > { %1467 = vmatmul.mubr.msk.bf16.gmra.mxu0 %vm615_vm5, %v1109_v26 }
 0x33d   : > { %v1464_v28 = vpop.f32.mrf.mxu0 }
 0x33e   : > { %v1201_v14 = vmul.f32 %v1464_v28, %v1386_v27 }
 0x33f   : > { %v1161_v30 = vpop.f32.mrf.mxu0 }
 0x340   : > { %v1216_v19 = vadd.f32 %v1387_v29, %v1201_v14  ;;  %v1199_v31 = vmul.f32 %v1386_v27, %v1161_v30 }
 0x341   : > { %v1465_v32 = vpop.f32.mrf.mxu0 }
 0x342   : > { %v1224_v33 = vadd.f32 %v1216_v19, %v1845_v3  ;;  %v1214_v20 = vadd.f32 %v1387_v29, %v1199_v31  ;;  %v1202_v35 = vmul.f32 %v1465_v32, %v1386_v27 }
 0x343   : > { %v1164_v37 = vpop.f32.mrf.mxu0 }
 0x344   : > { %v1232_v38 = vmax.f32 %v1224_v33, 0.0  ;;  %v1222_v34 = vadd.f32 %v1214_v20, %v1841_v1  ;;  %v1217_v39 = vadd.f32 %v1387_v29, %v1202_v35  ;;  %v1200_v40 = vmul.f32 %v1386_v27, %v1164_v37 }
 0x346   : > { %1240 = vst.msk [vmem:[%s2039_s12 + $0x10] sm:$0xff] %vm399_vm0, %v1232_v38  ;;  %v1230_v41 = vmax.f32 %v1222_v34, 0.0  ;;  %v1225_v3 = vadd.f32 %v1217_v39, %v1849_v5  ;;  %v1215_v42 = vadd.f32 %v1387_v29, %v1200_v40  ;;  %v1468_v43 = vpop.f32.mrf.mxu0 }
 0x347   : > { %v1205_v45 = vmul.f32 %v1468_v43, %v1386_v27 }
 0x348   : > { %1238 = vst.msk [vmem:[%s2039_s12] sm:$0xff] %vm399_vm0, %v1230_v41  ;;  %v1233_v44 = vmax.f32 %v1225_v3, 0.0  ;;  %v1223_v1 = vadd.f32 %v1215_v42, %v1843_v2  ;;  %v1177_v46 = vpop.f32.mrf.mxu0 }
 0x349   : > { %v1220_v48 = vadd.f32 %v1387_v29, %v1205_v45  ;;  %v1203_v49 = vmul.f32 %v1386_v27, %v1177_v46 }
 0x34a   : > { %1241 = vst.msk [vmem:[%s2039_s12 + $0x18] sm:$0xff] %vm399_vm0, %v1233_v44  ;;  %v1231_v47 = vmax.f32 %v1223_v1, 0.0  ;;  %v1469_v36 = vpop.f32.mrf.mxu0 }
 0x34b   : > { %v1228_v5 = vadd.f32 %v1220_v48, %v1859_v10  ;;  %v1218_v50 = vadd.f32 %v1387_v29, %v1203_v49  ;;  %v1206_v51 = vmul.f32 %v1469_v36, %v1386_v27 }
 0x34c   : > { %1239 = vst.msk [vmem:[%s2039_s12 + $0x8] sm:$0xff] %vm399_vm0, %v1231_v47  ;;  %v1180_v2 = vpop.f32.mrf.mxu0 }
 0x34d   : > { %v1236_v52 = vmax.f32 %v1228_v5, 0.0  ;;  %v1226_v53 = vadd.f32 %v1218_v50, %v1851_v6  ;;  %v1221_v54 = vadd.f32 %v1387_v29, %v1206_v51  ;;  %v1204_v55 = vmul.f32 %v1386_v27, %v1180_v2 }
 0x34f   : > { %1244 = vst.msk [vmem:[%s2039_s12 + $0x30] sm:$0xff] %vm399_vm0, %v1236_v52  ;;  %v1234_v56 = vmax.f32 %v1226_v53, 0.0  ;;  %v1229_v57 = vadd.f32 %v1221_v54, %v1861_v11  ;;  %v1219_v58 = vadd.f32 %v1387_v29, %v1204_v55 }
 0x351   : > { %1242 = vst.msk [vmem:[%s2039_s12 + $0x20] sm:$0xff] %vm399_vm0, %v1234_v56  ;;  %v1237_v10 = vmax.f32 %v1229_v57, 0.0  ;;  %v1227_v59 = vadd.f32 %v1219_v58, %v1853_v7 }
 0x353   : > { %1245 = vst.msk [vmem:[%s2039_s12 + $0x38] sm:$0xff] %vm399_vm0, %v1237_v10  ;;  %v1235_v6 = vmax.f32 %v1227_v59, 0.0 }
 0x355   : > { %1243 = vst.msk [vmem:[%s2039_s12 + $0x28] sm:$0xff] %vm399_vm0, %v1235_v6 }
 0x356   : > { %1615 = shalt.err (!%p1612_p10)
}
 0x357   : > { %s1616_s11 = scalar_lea.hbm %s2064_s27, 1024  ;;  %s1620_s29 = scalar_lea.hbm %s2124_s10, 2048 }
 0x358   : > { %p1617_p0 = scmp.ne.s32.totalorder %s2064_s27, %s1616_s11  ;;  %p1621_p1 = scmp.lt.s32.totalorder %s2064_s27, %s2124_s10 }
 0x359   : > { %p1622_p3 = scmp.lt.s32.totalorder %s1620_s29, %s1616_s11 }
 0x35a   : > { %p1618_p2 = pnand %p1617_p0, %p2139_p12 }
 0x35b   : > { %p1623_p6 = por %p1622_p3, %p1621_p1 }
 0x35c   : > { %p1619_p9 = pneg %p1618_p2 }
 0x35e   : > { %p1624_p11 = pnand %p1623_p6, %p1619_p9 }
 0x360   : > { %1627 = shalt.err (!%p1624_p11)
}
 0x361   : > { %s1675_s18 = smov 128  }
 0x362   : > { %1478 = dma.vmem_to_hbm [thread:$0]  (%p2139_p12), %s2068_s24, 1024, %s2064_s27, %s1247_s17, %s1675_s18, %s1675_s18, %s1672_s28  }
 0x363 PF: > { %s1275_s15 = sand.u32 1, %s1654_s13   ;;  %p2140_p13 = scmp.ne.s32.totalorder %s2136_s26, 0 }
 0x364   : > { %p2141_p4 = scmp.ge.s32.totalorder %s1666_s16, 2  ;;  %s1276_s30 = scalar_lea.sflag [#allocation6], %s1275_s15 }
 0x366   : > { %p1485_p5 = pnand %p2141_p4, %p2140_p13 }
 0x368   : > { %p1486_p7 = pneg %p1485_p5 }
 0x36a   : > { %1649 = dma.done.wait (%p1486_p7), %s1276_s30, 1024  }
 0x36b   : > { %1651 = vsyncadd (%p1486_p7), %s1276_s30, 4294966272  ;;  %s2142_s16 = sld [smem:[#allocation11_spill]]  ;;  %s2145_s13 = smov %s1658_s14 }
 0x36c   : > { %s2143_s25 = sld [smem:[#allocation10_spill]] }
 0x36d   : > { %s2144_s15 = sld [smem:[#allocation12_spill]] }
 0x371   : > { %p23_p8 = scmp.ge.s32.totalorder %s2142_s16, 4  }
 0x372   : > { %s2146_s14 = smov %s2143_s25 }
 0x373   :  { %25 = sbr.rel (!%p23_p8) target bundleno = 5 (0x5), region = 110 }
 0x378   :  { %1281 = vsyncpa [#allocation5], 1 }
 0x379   :  { %1283 = vsyncpa [#allocation5 + $0x1], 1 }
 0x37a   :  { %1284 = vsyncpa [#allocation6], 1 }
 0x37b   :  { %1286 = vsyncpa [#allocation6 + $0x1], 1 }

</bundles_post_ra>
